<compile_context>
chip_gen: v6e
topology: v6e:2x2x1
jax: 0.10.0
libtpu: 0.0.40
codegen_flags: <defaults>
</compile_context>

<pallas_src>
import jax
import jax.numpy as jnp
from jax.experimental import pallas as pl
from jax.experimental.pallas import tpu as pltpu


def scorer_kernel(ids_ref, mask_ref, emb_tab_ref,
                  w1_ref, w2_ref, b2_ref,
                  w3_ref, b3_ref, w4_ref, b4_ref,
                  w5row_ref, b5_ref,
                  out_ref):
    TB, S = ids_ref.shape
    V, D = emb_tab_ref.shape
    H1 = w2_ref.shape[1]

    ids = ids_ref[...]                                        # [TB, S]  int32
    mask = mask_ref[...]                                      # [TB, S]  f32

    # ---- fused embedding gather: one_hot(ids) @ emb_table on the MXU (V is small)
    iota_v = jax.lax.broadcasted_iota(jnp.int32, (TB, S, V), 2)
    onehot = (ids[:, :, None] == iota_v).astype(jnp.float32)  # [TB, S, V]
    onehot2d = onehot.reshape(TB * S, V).astype(jnp.bfloat16) # flatten -> 2D matmul
    emb = jnp.dot(onehot2d, emb_tab_ref[...],
                  preferred_element_type=jnp.float32)         # [TB*S, D] (exact row pick)

    # ---- embedding_transformer: Linear(D,D,no bias) -> ReLU -> Linear(D,H1) -> ReLU
    y = jnp.dot(emb.astype(jnp.bfloat16), w1_ref[...],
                preferred_element_type=jnp.float32)
    y = jnp.maximum(y, 0.0)
    y = jnp.dot(y.astype(jnp.bfloat16), w2_ref[...],
                preferred_element_type=jnp.float32) + b2_ref[...]
    y = jnp.maximum(y, 0.0)                                   # [TB*S, H1] f32

    # ---- mask padded tokens (AFTER bias + ReLU, matching the reference) and
    # ---- reduce over the word-set axis S
    y = y.reshape(TB, S, H1) * mask[:, :, None]
    s = jnp.sum(y, axis=1)                                    # [TB, H1] f32

    # ---- post_transformer: Linear -> ReLU -> Linear -> Dropout(id) -> ReLU -> Linear
    p = jnp.dot(s.astype(jnp.bfloat16), w3_ref[...],
                preferred_element_type=jnp.float32) + b3_ref[...]
    p = jnp.maximum(p, 0.0)                                   # [TB, H2]
    p = jnp.dot(p.astype(jnp.bfloat16), w4_ref[...],
                preferred_element_type=jnp.float32) + b4_ref[...]
    # TODO(synk): Dropout(0.1) omitted -> eval-mode identity (no in-kernel PRNG mask).
    p = jnp.maximum(p, 0.0)                                   # [TB, H2//2]

    # final Linear(H2//2, 1): VPU multiply + lane reduction (avoid N=1 MXU matvec)
    out = jnp.sum(p * w5row_ref[...], axis=-1, keepdims=True) + b5_ref[...]
    out_ref[...] = out                                        # [TB, 1]


def scorer_forward(input_ids, mask, params):
    """input_ids: [B, S] int32, mask: [B, S] float -> scores [B] float32."""
    B, S = input_ids.shape
    V, D = params["emb_table"].shape
    H1 = params["w2"].shape[1]
    H2 = params["w3"].shape[1]
    Hh = H2 // 2

    # Batch tile: largest tile respecting the (8,128)/full-dim BlockSpec rule while
    # keeping the double-buffered tile footprint tiny (fits v7x's 64 MiB VMEM easily).
    if B > 128 and B % 128 == 0:
        tb = 128
    else:
        tb = B
    grid = (B // tb,)

    # bf16 matmul operands (f32 accumulation in-kernel); biases / VPU path stay f32.
    emb_tab = params["emb_table"].astype(jnp.bfloat16)
    w1 = params["w1"].astype(jnp.bfloat16)
    w2 = params["w2"].astype(jnp.bfloat16)
    w3 = params["w3"].astype(jnp.bfloat16)
    w4 = params["w4"].astype(jnp.bfloat16)
    w5row = params["w5"].T.astype(jnp.float32)        # [1, H2//2] for the VPU path
    b2, b3, b4, b5 = params["b2"], params["b3"], params["b4"], params["b5"]

    ids = input_ids.astype(jnp.int32)
    mask = mask.astype(jnp.float32)

    def full_spec(arr):
        # whole array, resident across all grid steps
        return pl.BlockSpec(arr.shape, lambda i: (0,) * arr.ndim)

    in_specs = [
        pl.BlockSpec((tb, S), lambda i: (i, 0)),       # input_ids tile
        pl.BlockSpec((tb, S), lambda i: (i, 0)),       # mask tile
        full_spec(emb_tab),
        full_spec(w1), full_spec(w2), full_spec(b2),
        full_spec(w3), full_spec(b3), full_spec(w4), full_spec(b4),
        full_spec(w5row), full_spec(b5),
    ]
    out_spec = pl.BlockSpec((tb, 1), lambda i: (i, 0))

    flops = (2 * B * S * (V * D + D * D + D * H1)
             + 2 * B * (H1 * H2 + H2 * Hh + Hh))
    bytes_accessed = (ids.size * 4 + mask.size * 4 + B * 4
                      + (emb_tab.size + w1.size + w2.size + w3.size + w4.size) * 2
                      + (b2.size + b3.size + b4.size + w5row.size + b5.size) * 4)

    out = pl.pallas_call(
        scorer_kernel,
        out_shape=jax.ShapeDtypeStruct((B, 1), jnp.float32),
        grid=grid,
        in_specs=in_specs,
        out_specs=out_spec,
        compiler_params=pltpu.CompilerParams(
            dimension_semantics=("parallel",)),        # megacore split on v7x
        cost_estimate=pl.CostEstimate(
            flops=flops, transcendentals=0, bytes_accessed=bytes_accessed),
    )(ids, mask, emb_tab, w1, w2, b2, w3, b3, w4, b4, w5row, b5)
    return out[:, 0]                                   # squeeze(-1)


def make_params(key, vocab_size, D, H1, H2):
    ks = jax.random.split(key, 8)
    emb_table = jax.random.normal(ks[0], (vocab_size, D), jnp.float32) * 0.1
    emb_table = emb_table.at[0].set(0.0)               # padding_idx=0 -> zero row
    # weights stored pre-transposed as [in, out] (PyTorch Linear weight is [out, in])
    params = {
        "emb_table": emb_table,
        "w1": jax.random.normal(ks[1], (D, D), jnp.float32) * 0.1,
        "w2": jax.random.normal(ks[2], (D, H1), jnp.float32) * 0.1,
        "b2": jax.random.normal(ks[3], (1, H1), jnp.float32) * 0.1,
        "w3": jax.random.normal(ks[4], (H1, H2), jnp.float32) * 0.1,
        "b3": jax.random.normal(ks[5], (1, H2), jnp.float32) * 0.1,
        "w4": jax.random.normal(ks[6], (H2, H2 // 2), jnp.float32) * 0.1,
        "b4": jnp.zeros((1, H2 // 2), jnp.float32),
        "w5": jax.random.normal(ks[7], (H2 // 2, 1), jnp.float32) * 0.1,
        "b5": jnp.zeros((1, 1), jnp.float32),
    }
    return params


def scorer_reference(input_ids, mask, params):
    # pure-f32 reference, matching the PyTorch module's forward semantics
    emb = jnp.take(params["emb_table"], input_ids, axis=0)
    y = jnp.maximum(emb @ params["w1"], 0.0)
    y = jnp.maximum(y @ params["w2"] + params["b2"], 0.0)
    y = y * mask[:, :, None]
    s = jnp.sum(y, axis=1)
    p = jnp.maximum(s @ params["w3"] + params["b3"], 0.0)
    p = jnp.maximum(p @ params["w4"] + params["b4"], 0.0)
    return (p @ params["w5"] + params["b5"])[:, 0]


if __name__ == "__main__":
    B, S, D = 2, 8, 32          # batch, max_set_size, embedding_dim
    H1, H2 = 32, 32             # embed_trans_hidden_size, post_trans_hidden_size
    V = 64                      # vocab size

    key = jax.random.PRNGKey(0)
    k_ids, k_mask, k_params = jax.random.split(key, 3)

    input_ids = jax.random.randint(k_ids, (B, S), 0, V, dtype=jnp.int32)
    # mask: 1.0 for real tokens, 0.0 for padding (pad last two positions of each row)
    mask = jnp.ones((B, S), jnp.float32).at[:, -2:].set(0.0)
    input_ids = input_ids * mask.astype(jnp.int32)   # padded positions -> id 0

    params = make_params(k_params, V, D, H1, H2)

    out = scorer_forward(input_ids, mask, params)
    out = jax.block_until_ready(out)

    ref = scorer_reference(input_ids, mask, params)
    assert out.shape == (B,)
    # bf16 matmul operands (f32 accumulation) -> loosened tolerance vs f32 reference
    assert jnp.allclose(out, ref, atol=5e-2, rtol=5e-2), (out, ref)

    print("KERNEL_OK")
</pallas_src>

<mosaic_0001>
module attributes {stable_mosaic.version = 11 : i64} {
  func.func @scorer_kernel(%arg0: i32, %arg1: memref<2x8xi32, #tpu.memory_space<vmem>>, %arg2: memref<2x8xf32, #tpu.memory_space<vmem>>, %arg3: memref<64x32xbf16, #tpu.memory_space<vmem>>, %arg4: memref<32x32xbf16, #tpu.memory_space<vmem>>, %arg5: memref<32x32xbf16, #tpu.memory_space<vmem>>, %arg6: memref<1x32xf32, #tpu.memory_space<vmem>>, %arg7: memref<32x32xbf16, #tpu.memory_space<vmem>>, %arg8: memref<1x32xf32, #tpu.memory_space<vmem>>, %arg9: memref<32x16xbf16, #tpu.memory_space<vmem>>, %arg10: memref<1x16xf32, #tpu.memory_space<vmem>>, %arg11: memref<1x16xf32, #tpu.memory_space<vmem>>, %arg12: memref<1x1xf32, #tpu.memory_space<vmem>>, %arg13: memref<2x1xf32, #tpu.memory_space<vmem>>) attributes {dimension_semantics = [#tpu.dimension_semantics<parallel>], iteration_bounds = array<i64: 1>, scalar_prefetch = 0 : i64, scratch_operands = 0 : i64, tpu.core_type = #tpu.core_type<tc>, window_params = [{transform_indices = @transform_0, window_bounds = array<i64: 2, 8>}, {transform_indices = @transform_1, window_bounds = array<i64: 2, 8>}, {pipeline_mode = #tpu.pipeline_mode<synchronous>, transform_indices = @transform_2, window_bounds = array<i64: 64, 32>}, {pipeline_mode = #tpu.pipeline_mode<synchronous>, transform_indices = @transform_3, window_bounds = array<i64: 32, 32>}, {pipeline_mode = #tpu.pipeline_mode<synchronous>, transform_indices = @transform_4, window_bounds = array<i64: 32, 32>}, {pipeline_mode = #tpu.pipeline_mode<synchronous>, transform_indices = @transform_5, window_bounds = array<i64: 1, 32>}, {pipeline_mode = #tpu.pipeline_mode<synchronous>, transform_indices = @transform_6, window_bounds = array<i64: 32, 32>}, {pipeline_mode = #tpu.pipeline_mode<synchronous>, transform_indices = @transform_7, window_bounds = array<i64: 1, 32>}, {pipeline_mode = #tpu.pipeline_mode<synchronous>, transform_indices = @transform_8, window_bounds = array<i64: 32, 16>}, {pipeline_mode = #tpu.pipeline_mode<synchronous>, transform_indices = @transform_9, window_bounds = array<i64: 1, 16>}, {pipeline_mode = #tpu.pipeline_mode<synchronous>, transform_indices = @transform_10, window_bounds = array<i64: 1, 16>}, {pipeline_mode = #tpu.pipeline_mode<synchronous>, transform_indices = @transform_11, window_bounds = array<i64: 1, 1>}, {transform_indices = @transform_12, window_bounds = array<i64: 2, 1>}]} {
    %c0 = arith.constant 0 : index
    %c0_0 = arith.constant 0 : index
    %0 = vector.load %arg1[%c0, %c0_0] : memref<2x8xi32, #tpu.memory_space<vmem>>, vector<2x8xi32>
    %c0_1 = arith.constant 0 : index
    %c0_2 = arith.constant 0 : index
    %1 = vector.load %arg2[%c0_1, %c0_2] : memref<2x8xf32, #tpu.memory_space<vmem>>, vector<2x8xf32>
    %2 = tpu.iota {dimensions = array<i32: 2>} : vector<2x8x64xi32>
    %3 = vector.shape_cast %0 : vector<2x8xi32> to vector<2x8x1xi32>
    %4 = vector.broadcast %3 : vector<2x8x1xi32> to vector<2x8x64xi32>
    %5 = arith.cmpi eq, %4, %2 : vector<2x8x64xi32>
    %6 = arith.extui %5 : vector<2x8x64xi1> to vector<2x8x64xi32>
    %7 = arith.sitofp %6 : vector<2x8x64xi32> to vector<2x8x64xf32>
    %8 = vector.shape_cast %7 : vector<2x8x64xf32> to vector<16x64xf32>
    %9 = arith.truncf %8 : vector<16x64xf32> to vector<16x64xbf16>
    %c0_3 = arith.constant 0 : index
    %c0_4 = arith.constant 0 : index
    %10 = vector.load %arg3[%c0_3, %c0_4] : memref<64x32xbf16, #tpu.memory_space<vmem>>, vector<64x32xbf16>
    %cst = arith.constant dense<0.000000e+00> : vector<16x32xf32>
    %11 = tpu.matmul %9, %10, %cst {dimension_numbers = #tpu.dot_dimension_numbers<[1], [0], [0], [1], [0, 0, 1, 1], [], []>} : vector<16x64xbf16>, vector<64x32xbf16>, vector<16x32xf32> -> vector<16x32xf32>
    %12 = arith.truncf %11 : vector<16x32xf32> to vector<16x32xbf16>
    %c0_5 = arith.constant 0 : index
    %c0_6 = arith.constant 0 : index
    %13 = vector.load %arg4[%c0_5, %c0_6] : memref<32x32xbf16, #tpu.memory_space<vmem>>, vector<32x32xbf16>
    %cst_7 = arith.constant dense<0.000000e+00> : vector<16x32xf32>
    %14 = tpu.matmul %12, %13, %cst_7 {dimension_numbers = #tpu.dot_dimension_numbers<[1], [0], [0], [1], [0, 0, 1, 1], [], []>} : vector<16x32xbf16>, vector<32x32xbf16>, vector<16x32xf32> -> vector<16x32xf32>
    %cst_8 = arith.constant 0.000000e+00 : f32
    %15 = vector.broadcast %cst_8 : f32 to vector<16x32xf32>
    %16 = arith.maximumf %14, %15 : vector<16x32xf32>
    %17 = arith.truncf %16 : vector<16x32xf32> to vector<16x32xbf16>
    %c0_9 = arith.constant 0 : index
    %c0_10 = arith.constant 0 : index
    %18 = vector.load %arg5[%c0_9, %c0_10] : memref<32x32xbf16, #tpu.memory_space<vmem>>, vector<32x32xbf16>
    %cst_11 = arith.constant dense<0.000000e+00> : vector<16x32xf32>
    %19 = tpu.matmul %17, %18, %cst_11 {dimension_numbers = #tpu.dot_dimension_numbers<[1], [0], [0], [1], [0, 0, 1, 1], [], []>} : vector<16x32xbf16>, vector<32x32xbf16>, vector<16x32xf32> -> vector<16x32xf32>
    %c0_12 = arith.constant 0 : index
    %c0_13 = arith.constant 0 : index
    %20 = vector.load %arg6[%c0_12, %c0_13] : memref<1x32xf32, #tpu.memory_space<vmem>>, vector<1x32xf32>
    %21 = vector.broadcast %20 : vector<1x32xf32> to vector<16x32xf32>
    %22 = arith.addf %19, %21 : vector<16x32xf32>
    %cst_14 = arith.constant 0.000000e+00 : f32
    %23 = vector.broadcast %cst_14 : f32 to vector<16x32xf32>
    %24 = arith.maximumf %22, %23 : vector<16x32xf32>
    %25 = vector.shape_cast %24 : vector<16x32xf32> to vector<2x8x32xf32>
    %26 = vector.shape_cast %1 : vector<2x8xf32> to vector<2x8x1xf32>
    %27 = vector.broadcast %26 : vector<2x8x1xf32> to vector<2x8x32xf32>
    %28 = arith.mulf %25, %27 : vector<2x8x32xf32>
    %cst_15 = arith.constant dense<0.000000e+00> : vector<2x32xf32>
    %29 = vector.multi_reduction <add>, %28, %cst_15 [1] : vector<2x8x32xf32> to vector<2x32xf32>
    %30 = arith.truncf %29 : vector<2x32xf32> to vector<2x32xbf16>
    %c0_16 = arith.constant 0 : index
    %c0_17 = arith.constant 0 : index
    %31 = vector.load %arg7[%c0_16, %c0_17] : memref<32x32xbf16, #tpu.memory_space<vmem>>, vector<32x32xbf16>
    %cst_18 = arith.constant dense<0.000000e+00> : vector<2x32xf32>
    %32 = tpu.matmul %30, %31, %cst_18 {dimension_numbers = #tpu.dot_dimension_numbers<[1], [0], [0], [1], [0, 0, 1, 1], [], []>} : vector<2x32xbf16>, vector<32x32xbf16>, vector<2x32xf32> -> vector<2x32xf32>
    %c0_19 = arith.constant 0 : index
    %c0_20 = arith.constant 0 : index
    %33 = vector.load %arg8[%c0_19, %c0_20] : memref<1x32xf32, #tpu.memory_space<vmem>>, vector<1x32xf32>
    %34 = vector.broadcast %33 : vector<1x32xf32> to vector<2x32xf32>
    %35 = arith.addf %32, %34 : vector<2x32xf32>
    %cst_21 = arith.constant 0.000000e+00 : f32
    %36 = vector.broadcast %cst_21 : f32 to vector<2x32xf32>
    %37 = arith.maximumf %35, %36 : vector<2x32xf32>
    %38 = arith.truncf %37 : vector<2x32xf32> to vector<2x32xbf16>
    %c0_22 = arith.constant 0 : index
    %c0_23 = arith.constant 0 : index
    %39 = vector.load %arg9[%c0_22, %c0_23] : memref<32x16xbf16, #tpu.memory_space<vmem>>, vector<32x16xbf16>
    %cst_24 = arith.constant dense<0.000000e+00> : vector<2x16xf32>
    %40 = tpu.matmul %38, %39, %cst_24 {dimension_numbers = #tpu.dot_dimension_numbers<[1], [0], [0], [1], [0, 0, 1, 1], [], []>} : vector<2x32xbf16>, vector<32x16xbf16>, vector<2x16xf32> -> vector<2x16xf32>
    %c0_25 = arith.constant 0 : index
    %c0_26 = arith.constant 0 : index
    %41 = vector.load %arg10[%c0_25, %c0_26] : memref<1x16xf32, #tpu.memory_space<vmem>>, vector<1x16xf32>
    %42 = vector.broadcast %41 : vector<1x16xf32> to vector<2x16xf32>
    %43 = arith.addf %40, %42 : vector<2x16xf32>
    %cst_27 = arith.constant 0.000000e+00 : f32
    %44 = vector.broadcast %cst_27 : f32 to vector<2x16xf32>
    %45 = arith.maximumf %43, %44 : vector<2x16xf32>
    %c0_28 = arith.constant 0 : index
    %c0_29 = arith.constant 0 : index
    %46 = vector.load %arg11[%c0_28, %c0_29] : memref<1x16xf32, #tpu.memory_space<vmem>>, vector<1x16xf32>
    %47 = vector.broadcast %46 : vector<1x16xf32> to vector<2x16xf32>
    %48 = arith.mulf %45, %47 : vector<2x16xf32>
    %cst_30 = arith.constant dense<0.000000e+00> : vector<2xf32>
    %49 = vector.multi_reduction <add>, %48, %cst_30 [1] : vector<2x16xf32> to vector<2xf32>
    %50 = vector.shape_cast %49 : vector<2xf32> to vector<2x1xf32>
    %c0_31 = arith.constant 0 : index
    %c0_32 = arith.constant 0 : index
    %51 = vector.load %arg12[%c0_31, %c0_32] : memref<1x1xf32, #tpu.memory_space<vmem>>, vector<1x1xf32>
    %52 = vector.broadcast %51 : vector<1x1xf32> to vector<2x1xf32>
    %53 = arith.addf %50, %52 : vector<2x1xf32>
    %c0_33 = arith.constant 0 : index
    %c0_34 = arith.constant 0 : index
    %54 = vector.load %arg13[%c0_33, %c0_34] : memref<2x1xf32, #tpu.memory_space<vmem>>, vector<2x1xf32>
    tpu.vector_store %arg13[%c0_33, %c0_34], %53 {strides = array<i32>} : memref<2x1xf32, #tpu.memory_space<vmem>>, vector<2x1xf32>,
    return
  }
  func.func @transform_0(%arg0: i32) -> (i32, i32) {
    %c0_i32 = arith.constant 0 : i32
    %c0_i32_0 = arith.constant 0 : i32
    return %arg0, %c0_i32 : i32, i32
  }
  func.func @transform_1(%arg0: i32) -> (i32, i32) {
    %c0_i32 = arith.constant 0 : i32
    %c0_i32_0 = arith.constant 0 : i32
    return %arg0, %c0_i32 : i32, i32
  }
  func.func @transform_2(%arg0: i32) -> (i32, i32) {
    %c0_i32 = arith.constant 0 : i32
    %c0_i32_0 = arith.constant 0 : i32
    %c0_i32_1 = arith.constant 0 : i32
    return %c0_i32, %c0_i32_0 : i32, i32
  }
  func.func @transform_3(%arg0: i32) -> (i32, i32) {
    %c0_i32 = arith.constant 0 : i32
    %c0_i32_0 = arith.constant 0 : i32
    %c0_i32_1 = arith.constant 0 : i32
    return %c0_i32, %c0_i32_0 : i32, i32
  }
  func.func @transform_4(%arg0: i32) -> (i32, i32) {
    %c0_i32 = arith.constant 0 : i32
    %c0_i32_0 = arith.constant 0 : i32
    %c0_i32_1 = arith.constant 0 : i32
    return %c0_i32, %c0_i32_0 : i32, i32
  }
  func.func @transform_5(%arg0: i32) -> (i32, i32) {
    %c0_i32 = arith.constant 0 : i32
    %c0_i32_0 = arith.constant 0 : i32
    %c0_i32_1 = arith.constant 0 : i32
    return %c0_i32, %c0_i32_0 : i32, i32
  }
  func.func @transform_6(%arg0: i32) -> (i32, i32) {
    %c0_i32 = arith.constant 0 : i32
    %c0_i32_0 = arith.constant 0 : i32
    %c0_i32_1 = arith.constant 0 : i32
    return %c0_i32, %c0_i32_0 : i32, i32
  }
  func.func @transform_7(%arg0: i32) -> (i32, i32) {
    %c0_i32 = arith.constant 0 : i32
    %c0_i32_0 = arith.constant 0 : i32
    %c0_i32_1 = arith.constant 0 : i32
    return %c0_i32, %c0_i32_0 : i32, i32
  }
  func.func @transform_8(%arg0: i32) -> (i32, i32) {
    %c0_i32 = arith.constant 0 : i32
    %c0_i32_0 = arith.constant 0 : i32
    %c0_i32_1 = arith.constant 0 : i32
    return %c0_i32, %c0_i32_0 : i32, i32
  }
  func.func @transform_9(%arg0: i32) -> (i32, i32) {
    %c0_i32 = arith.constant 0 : i32
    %c0_i32_0 = arith.constant 0 : i32
    %c0_i32_1 = arith.constant 0 : i32
    return %c0_i32, %c0_i32_0 : i32, i32
  }
  func.func @transform_10(%arg0: i32) -> (i32, i32) {
    %c0_i32 = arith.constant 0 : i32
    %c0_i32_0 = arith.constant 0 : i32
    %c0_i32_1 = arith.constant 0 : i32
    return %c0_i32, %c0_i32_0 : i32, i32
  }
  func.func @transform_11(%arg0: i32) -> (i32, i32) {
    %c0_i32 = arith.constant 0 : i32
    %c0_i32_0 = arith.constant 0 : i32
    %c0_i32_1 = arith.constant 0 : i32
    return %c0_i32, %c0_i32_0 : i32, i32
  }
  func.func @transform_12(%arg0: i32) -> (i32, i32) {
    %c0_i32 = arith.constant 0 : i32
    %c0_i32_0 = arith.constant 0 : i32
    return %arg0, %c0_i32 : i32, i32
  }
}

</mosaic_0001>

<bundles_post_ra>
// kernel: tpu_custom_call.1
= control target key start
LH: loop header
LB: loop body
LE: loop exit
PB: predicated region body
PF: predicated region fallthrough
CT: control target
= control target key end

     0   :  { %v46_v0 = vlaneseq  ;;  %v579_v1 = vmov 0.0   ;;  %vm580_vm0 = vmmov 0   ;;  %vm101_vm3 = vcmask 523264   ;;  %s736_s0 = inlined_call_operand.vmem [shape: s32[2,8], index: 0, kind: input, shape index: {}]   ;;  %s737_s2 = inlined_call_operand.vmem [shape: bf16[64,32], index: 2, kind: input, shape index: {}]   ;;  %s738_s3 = inlined_call_operand.vmem [shape: bf16[32,32], index: 3, kind: input, shape index: {}]   ;;  %s739_s4 = inlined_call_operand.vmem [shape: bf16[32,32], index: 4, kind: input, shape index: {}]   ;;  %s740_s1 = inlined_call_operand.vmem [shape: f32[2,8], index: 1, kind: input, shape index: {}]   ;;  %s741_s6 = inlined_call_operand.vmem [shape: bf16[32,32], index: 6, kind: input, shape index: {}]   ;;  %s742_s8 = inlined_call_operand.vmem [shape: bf16[32,16], index: 8, kind: input, shape index: {}]   ;;  %s743_s5 = inlined_call_operand.vmem [shape: f32[1,32], index: 5, kind: input, shape index: {}]   ;;  %s744_s7 = inlined_call_operand.vmem [shape: f32[1,32], index: 7, kind: input, shape index: {}]   ;;  %s745_s11 = inlined_call_operand.<no memory space> [shape: f32[1,1], index: 11, kind: input, shape index: {}]   ;;  %s746_s9 = inlined_call_operand.vmem [shape: f32[1,16], index: 9, kind: input, shape index: {}]   ;;  %s747_s10 = inlined_call_operand.vmem [shape: f32[1,16], index: 10, kind: input, shape index: {}]   ;;  %s748_s12 = inlined_call_operand.vmem [shape: f32[2,1], index: 12, kind: output, shape index: {}]  }
   0x1   :  { %521 = vmatprep.subr.bf16.mxu0 %v579_v1  ;;  %533 = vmatprep.subr.bf16.mxu1 %v579_v1  ;;  %v567_v3 = vld [vmem:[%s737_s2 + $0x18] sm:$0xff]   ;;  %v44_v4 = vld [vmem:[%s736_s0] sm:$0x3]  ;;  %v568_v7 = vld [vmem:[%s737_s2 + $0x10] sm:$0xff]   ;;  %vm163_vm4 = vcmask 261120   ;;  %vm327_vm5 = vcmask 1041409  }
   0x2   :  { %v49_v2 = vshrl.u32 %v46_v0, 7  ;;  %522 = vmatpush3.bf16.msra.mxu0 %v567_v3  ;;  %529 = vmatprep.mubr.msk.bf16.mxu0 %vm580_vm0, %v579_v1  ;;  %v569_v10 = vld [vmem:[%s737_s2 + $0x8] sm:$0xff]   ;;  %v570_v11 = vld [vmem:[%s737_s2] sm:$0xff]   ;;  %v47_v12 = vand.u32 127, %v46_v0  ;;  %vm462_vm6 = vcmask 123904   ;;  %vm474_vm7 = vcmask 1024  }
   0x3   :  { %523 = vmatprep.subr.bf16.mxu0 %v579_v1  ;;  %537 = vmatprep.mubr.msk.bf16.mxu1 %vm580_vm0, %v579_v1  ;;  %v571_v18 = vld [vmem:[%s738_s3 + $0x8] sm:$0xff]   ;;  %v572_v19 = vld [vmem:[%s738_s3] sm:$0xff]  }
   0x4   :  { %v50_v5 = vsub.s32 0, %v49_v2  ;;  %v57_v6 = vsub.s32 1, %v49_v2  ;;  %534 = vmatpush3.bf16.msra.mxu1 %v571_v18  ;;  %v573_v25 = vld [vmem:[%s739_s4 + $0x8] sm:$0xff]   ;;  %v574_v26 = vld [vmem:[%s739_s4] sm:$0xff]   ;;  %v17_v18 = vstv %s745_s11 }
   0x5   :  { %535 = vmatprep.subr.bf16.mxu1 %v579_v1  ;;  %v45_v27 = vld [vmem:[%s740_s1] sm:$0x3]  ;;  %v575_v37 = vld [vmem:[%s741_s6 + $0x8] sm:$0xff]   ;;  %18 = vst [vmem:[#allocation2] sm:$0x1] %v17_v18 }
   0x6   :  { %v51_v8 = vrot.slane %v44_v4, %v50_v5  ;;  %v58_v9 = vrot.slane %v44_v4, %v57_v6  ;;  %524 = vmatpush3.bf16.msra.mxu0 %v568_v7  ;;  %v283_v28 = vrot.slane %v45_v27, %v50_v5  ;;  %v290_v29 = vrot.slane %v45_v27, %v57_v6  ;;  %v576_v38 = vld [vmem:[%s741_s6] sm:$0xff]   ;;  %v577_v39 = vld [vmem:[%s742_s8 + $0x8] sm:$0xff]  }
   0x7   :  { %525 = vmatprep.subr.bf16.mxu0 %v579_v1  ;;  %v490_v40 = vld [vmem:[%s743_s5] ss:$0 sm:$0xff] }
   0x8   :  { %53 = vbcast.lane.b32.xlu0 %v51_v8, 256  ;;  %536 = vmatpush3.bf16.msra.mxu1 %v572_v19  ;;  %v498_v19 = vld [vmem:[%s746_s9] ss:$0 sm:$0xff] }
   0x9   :  { %541 = vmatprep.subr.bf16.mxu1 %v579_v1  ;;  %285 = vbcast.lane.b32.xlu1 %v283_v28, 256 }
   0xa   :  { %526 = vmatpush3.bf16.msra.mxu0 %v569_v10  ;;  %v494_v10 = vld [vmem:[%s744_s7] ss:$0 sm:$0xff] }
   0xb   :  { %527 = vmatprep.subr.bf16.mxu0 %v579_v1 }
   0xc   :  { %60 = vbcast.lane.b32.xlu0 %v58_v9, 256  ;;  %v578_v9 = vld [vmem:[%s742_s8] sm:$0xff]  }
   0xd   :  { %292 = vbcast.lane.b32.xlu1 %v290_v29, 256  ;;  %v503_v29 = vld [vmem:[#allocation2] ss:$0 sm:$0xff] }
   0xe   :  { %528 = vmatpush3.bf16.msra.mxu0 %v570_v11 }
   0xf   :  { %549 = vmatprep.subr.bf16.mxu0 %v579_v1 }
  0x7a   :  { %v54_v13 = vpop.permute.xlu0 %53 }
  0x7b   :  { %vm62_vm1 = vcmp.eq.s32.totalorder %v54_v13, %v47_v12  ;;  %v286_v42 = vpop.permute.xlu1 %285 }
  0x7c   :  { %v480_v15 = vsel %vm62_vm1, 1.0, %v579_v1 }
  0x7e   :  { %v61_v14 = vpop.permute.xlu0 %60 }
  0x7f   :  { %vm63_vm2 = vcmp.eq.s32.totalorder %v61_v14, %v47_v12  ;;  %v293_v50 = vpop.permute.xlu1 %292 }
  0x80   :  { %v481_v16 = vsel %vm63_vm2, 1.0, %v579_v1 }
  0x81   :  { %v68_v17 = vpack.c.bf16 %v481_v16, %v480_v15 }
  0x83   :  { %530 = vmatmul.mubr.msk.bf16.vlgmr.msra.gmra.mxu0 %vm101_vm3, %v68_v17 }
  0x84   :  { %553 = vmatprep.mubr.msk.bf16.mxu0 %vm580_vm0, %v579_v1  ;;  %550 = vmatpush3.bf16.msra.mxu0 %v575_v37 }
  0x85   :  { %551 = vmatprep.subr.bf16.mxu0 %v579_v1 }
  0x88   :  { %552 = vmatpush3.bf16.msra.mxu0 %v576_v38 }
 0x143   :  { %v139_v20 = vpop.f32.mrf.mxu0 }
 0x145   :  { %v531_v21 = vpop.f32.mrf.mxu0 }
 0x147   :  { %v142_v22 = vpop.f32.mrf.mxu0 }
 0x148   :  { %v146_v23 = vpack.c.bf16 %v142_v22, %v139_v20 }
 0x149   :  { %v532_v24 = vpop.f32.mrf.mxu0 }
 0x14a   :  { %538 = vmatmul.mubr.msk.bf16.vlgmr.msra.gmra.mxu1 %vm163_vm4, %v146_v23  ;;  %v502_v23 = vld [vmem:[%s747_s10] ss:$0 sm:$0xff] }
 0x14b   :  { %545 = vmatprep.mubr.msk.bf16.mxu1 %vm580_vm0, %v579_v1  ;;  %542 = vmatpush3.bf16.msra.mxu1 %v573_v25 }
 0x14c   :  { %543 = vmatprep.subr.bf16.mxu1 %v579_v1 }
 0x14f   :  { %544 = vmatpush3.bf16.msra.mxu1 %v574_v26 }
 0x150   :  { %557 = vmatprep.subr.bf16.mxu1 %v579_v1 }
 0x20a   :  { %v201_v30 = vpop.f32.mrf.mxu1 }
 0x20b   :  { %v208_v33 = vmax.f32 %v201_v30, 0.0 }
 0x20c   :  { %v539_v31 = vpop.f32.mrf.mxu1 }
 0x20e   :  { %v204_v32 = vpop.f32.mrf.mxu1 }
 0x20f   :  { %v209_v34 = vmax.f32 %v204_v32, 0.0 }
 0x210   :  { %v540_v35 = vpop.f32.mrf.mxu1 }
 0x211   :  { %v210_v36 = vpack.c.bf16 %v209_v34, %v208_v33 }
 0x213   :  { %546 = vmatmul.mubr.msk.bf16.vlgmr.msra.gmra.mxu1 %vm163_vm4, %v210_v36 }
 0x214   :  { %561 = vmatprep.mubr.msk.bf16.mxu1 %vm580_vm0, %v579_v1  ;;  %558 = vmatpush3.bf16.msra.mxu1 %v577_v39 }
 0x215   :  { %559 = vmatprep.subr.bf16.mxu1 %v579_v1 }
 0x218   :  { %560 = vmatpush3.bf16.msra.mxu1 %v578_v9 }
 0x2d3   :  { %v271_v41 = vpop.f32.mrf.mxu1 }
 0x2d4   :  { %v272_v43 = vadd.f32 %v490_v40, %v271_v41 }
 0x2d5   :  { %v547_v44 = vpop.f32.mrf.mxu1 }
 0x2d6   :  { %v278_v45 = vmax.f32 %v272_v43, 0.0 }
 0x2d7   :  { %v274_v46 = vpop.f32.mrf.mxu1 }
 0x2d8   :  { %v294_v47 = vmul.f32 %v286_v42, %v278_v45  ;;  %v275_v48 = vadd.f32 %v490_v40, %v274_v46 }
 0x2d9   :  { %v548_v49 = vpop.f32.mrf.mxu1 }
 0x2da   :  { %v296_v51 = vsel %vm163_vm4, %v294_v47, 0.0  ;;  %v279_v52 = vmax.f32 %v275_v48, 0.0 }
 0x2db   :  { %v297_v53 = vrot.slane %v296_v51, 4 }
 0x2dc   :  { %v295_v54 = vmul.f32 %v293_v50, %v279_v52 }
 0x2dd   :  { %v298_v55 = vadd.f32 %v297_v53, %v296_v51 }
 0x2de   :  { %v303_v56 = vsel %vm163_vm4, %v295_v54, 0.0 }
 0x2df   :  { %v299_v57 = vrot.slane %v298_v55, 2  ;;  %v304_v58 = vrot.slane %v303_v56, 4 }
 0x2e1   :  { %v300_v59 = vadd.f32 %v299_v57, %v298_v55  ;;  %v305_v60 = vadd.f32 %v304_v58, %v303_v56 }
 0x2e3   :  { %v301_v61 = vrot.slane %v300_v59, 1  ;;  %v306_v62 = vrot.slane %v305_v60, 2 }
 0x2e5   :  { %v302_v63 = vadd.f32 %v301_v61, %v300_v59  ;;  %v307_v0 = vadd.f32 %v306_v62, %v305_v60 }
 0x2e7   :  { %v308_v1 = vrot.slane %v307_v0, 1  ;;  %v310_v2 = vpack.c.bf16 %v302_v63, %v302_v63 }
 0x2e9   :  { %v309_v3 = vadd.f32 %v308_v1, %v307_v0  ;;  %v325_v5 = vunpack.c.l.b16 %v310_v2 }
 0x2eb   :  { %v311_v4 = vpack.c.bf16 %v309_v3, %v309_v3 }
 0x2ed   :  { %v326_v6 = vunpack.c.l.b16 %v311_v4 }
 0x2ef   :  { %v328_v7 = vsel %vm327_vm5, %v326_v6, %v325_v5 }
 0x2f0   :  { %v329_v8 = vpack.c.b16 %v328_v7, %v328_v7 }
 0x2f2   :  { %554 = vmatmul.mubr.msk.bf16.vlgmr.msra.gmra.mxu0 %vm163_vm4, %v329_v8 }
 0x3b2   :  { %v379_v11 = vpop.f32.mrf.mxu0 }
 0x3b3   :  { %v380_v12 = vadd.f32 %v494_v10, %v379_v11 }
 0x3b4   :  { %v555_v13 = vpop.f32.mrf.mxu0 }
 0x3b5   :  { %v385_v14 = vmax.f32 %v380_v12, 0.0 }
 0x3b6   :  { %v382_v15 = vpop.f32.mrf.mxu0 }
 0x3b7   :  { %v386_v16 = vpack.c.bf16 %v385_v14, %v385_v14 }
 0x3b8   :  { %v556_v17 = vpop.f32.mrf.mxu0 }
 0x3b9   :  { %562 = vmatmul.mubr.msk.bf16.vlgmr.msra.gmra.mxu1 %vm163_vm4, %v386_v16 }
 0x479   :  { %v447_v20 = vpop.f32.mrf.mxu1 }
 0x47a   :  { %v448_v21 = vadd.f32 %v498_v19, %v447_v20 }
 0x47b   :  { %v563_v22 = vpop.f32.mrf.mxu1 }
 0x47c   :  { %v453_v24 = vmax.f32 %v448_v21, 0.0 }
 0x47d   :  { %v450_v25 = vpop.f32.mrf.mxu1 }
 0x47e   :  { %v461_v26 = vmul.f32 %v502_v23, %v453_v24 }
 0x47f   :  { %v564_v27 = vpop.f32.mrf.mxu1 }
 0x480   :  { %v463_v28 = vsel %vm462_vm6, %v461_v26, 0.0 }
 0x481   :  { %464 = vadd.xlane.f32.xlu0 %v463_v28 }
 0x50a   :  { %v465_v30 = vpop.xlane.xlu0 %464 }
 0x50b   :  { %v473_v31 = vadd.f32 %v503_v29, %v465_v30 }
 0x50d   :  { %475 = vst.msk [vmem:[%s748_s12] sm:$0x3] %vm474_vm7, %v473_v31 }

</bundles_post_ra>
